<compile_context>
chip_gen: v6e
topology: v6e:2x2x1
jax: 0.10.0
libtpu: 0.0.40
codegen_flags: <defaults>
</compile_context>

<pallas_src>
import functools

import jax
import jax.numpy as jnp
from jax.experimental import pallas as pl
from jax.experimental.pallas import tpu as pltpu


# ----------------------------------------------------------------------------
# Small helpers
# ----------------------------------------------------------------------------
def _round_up(a: int, b: int) -> int:
    return (a + b - 1) // b * b


def _tpu_generation() -> str:
    try:
        kind = jax.devices()[0].device_kind.lower()
    except Exception:
        return "unknown"
    if "v7" in kind or "7x" in kind:
        return "v7x"
    if "v6" in kind or "6e" in kind:
        return "v6e"
    if "v5e" in kind or "v5 lite" in kind or "v5lite" in kind:
        return "v5e"
    return "unknown"


def _vmem_capacity_bytes(gen: str) -> int:
    try:
        cap = int(pltpu.get_tpu_info().vmem_capacity_bytes)
        if cap > 0:
            return cap
    except Exception:
        pass
    return (64 << 20) if gen == "v7x" else (128 << 20)


def _pick_th(H_p: int, preferred: int) -> int:
    """Largest multiple of 128 that is <= preferred and divides H_p."""
    th = min(preferred, H_p)
    th = max(128, th - th % 128)
    while H_p % th:
        th -= 128
    return th


def _block_spec(shape, index_map, *, single_buffer: bool = False):
    if single_buffer and hasattr(pl, "Buffered"):
        try:
            return pl.BlockSpec(shape, index_map, pipeline_mode=pl.Buffered(1))
        except TypeError:
            pass
    return pl.BlockSpec(shape, index_map)


# ----------------------------------------------------------------------------
# Kernels
# ----------------------------------------------------------------------------
_SQRT_2_OVER_PI = 0.7978845608028654


def _gelu_tanh(h):
    # 0.5*h*(1 + tanh(sqrt(2/pi)*(h + 0.044715*h^3))), written with one fewer
    # vmul (h*(1 + 0.044715*h*h)).  tanh goes to the EUP slot.
    inner = jnp.float32(_SQRT_2_OVER_PI) * (h * (1.0 + jnp.float32(0.044715) * (h * h)))
    return 0.5 * h * (1.0 + jnp.tanh(inner))


def _ffn_kernel_f32out(x_ref, w1_ref, b1_ref, w2_ref, b2_ref, o_ref):
    """float32 output: accumulate directly into the resident output block."""
    h_idx = pl.program_id(1)

    @pl.when(h_idx == 0)
    def _():
        o_ref[...] = jnp.zeros_like(o_ref)

    h = jnp.dot(x_ref[...], w1_ref[...], preferred_element_type=jnp.float32)
    h = h + b1_ref[...]
    g = _gelu_tanh(h)
    o_ref[...] += jnp.dot(
        g.astype(w2_ref.dtype), w2_ref[...], preferred_element_type=jnp.float32
    )

    @pl.when(h_idx == pl.num_programs(1) - 1)
    def _():
        o_ref[...] = o_ref[...] + b2_ref[...]


def _ffn_kernel_acc(x_ref, w1_ref, b1_ref, w2_ref, b2_ref, o_ref, acc_ref):
    """Narrow (e.g. bf16) output: f32 scratch accumulator, cast at the end."""
    h_idx = pl.program_id(1)

    @pl.when(h_idx == 0)
    def _():
        acc_ref[...] = jnp.zeros_like(acc_ref)

    h = jnp.dot(x_ref[...], w1_ref[...], preferred_element_type=jnp.float32)
    h = h + b1_ref[...]
    g = _gelu_tanh(h)
    acc_ref[...] += jnp.dot(
        g.astype(w2_ref.dtype), w2_ref[...], preferred_element_type=jnp.float32
    )

    @pl.when(h_idx == pl.num_programs(1) - 1)
    def _():
        o_ref[...] = (acc_ref[...] + b2_ref[...]).astype(o_ref.dtype)


# ----------------------------------------------------------------------------
# Host-side wrappers
# ----------------------------------------------------------------------------
def prepare_ffn_params(w1, b1, w2, b2, *, compute_dtype=jnp.bfloat16):
    """One-time weight prep (cast to MXU dtype + zero-pad to aligned dims).

    Hoisted out of the per-call path: for large E/H the cast+pad reads/writes
    hundreds of MiB and must not run on every forward call.
    Returns (w1_p, b1_p, w2_p, b2_p) ready for feed_forward().
    """
    gen = _tpu_generation()
    E, H = w1.shape
    # v6e/v7x MXUs are 256x256; pad to 256 when the real dims allow, else 128.
    e_align = 256 if (gen in ("v6e", "v7x") and E >= 256) else 128
    h_align = 256 if (gen in ("v6e", "v7x") and H >= 256) else 128
    E_p = _round_up(E, e_align)
    H_p = _round_up(H, h_align)

    w1_p = jnp.pad(w1.astype(compute_dtype), ((0, E_p - E), (0, H_p - H)))
    w2_p = jnp.pad(w2.astype(compute_dtype), ((0, H_p - H), (0, E_p - E)))
    b1_p = jnp.pad(b1.astype(jnp.float32), (0, H_p - H)).reshape(1, H_p)
    b2_p = jnp.pad(b2.astype(jnp.float32), (0, E_p - E)).reshape(1, E_p)
    return w1_p, b1_p, w2_p, b2_p


@functools.partial(jax.jit, static_argnames=("tile_m", "tile_h"))
def feed_forward(x, w1_p, b1_p, w2_p, b2_p, *, tile_m=None, tile_h=None):
    """x: (..., E) f32; prepared weights from prepare_ffn_params()."""
    E = x.shape[-1]
    M = 1
    for d in x.shape[:-1]:
        M *= d
    E_p, H_p = w1_p.shape
    assert w2_p.shape == (H_p, E_p), "w2 must be (H_p, E_p)"
    assert E_p % 128 == 0 and H_p % 128 == 0, "use prepare_ffn_params() first"
    assert E <= E_p

    gen = _tpu_generation()
    vmem_cap = _vmem_capacity_bytes(gen)
    out_dtype = x.dtype
    out_isz = jnp.dtype(out_dtype).itemsize
    acc_needed = jnp.dtype(out_dtype) != jnp.dtype(jnp.float32)
    compute_dtype = w1_p.dtype

    # Generation-aware default tiles.
    if tile_m is None:
        tile_m = {"v6e": 1024, "v7x": 512, "v5e": 512}.get(gen, 512)
    if tile_h is None:
        tile_h = {"v6e": 512, "v7x": 256, "v5e": 512}.get(gen, 512)

    tm = _round_up(min(tile_m, _round_up(M, 16)), 16)   # bf16 packs 16 sublanes
    M_p = _round_up(M, tm)
    th = _pick_th(H_p, tile_h)

    # v7x: the "parallel" row axis is what gets sharded across the 2 TCs —
    # make sure there are at least 2 row tiles.
    if gen == "v7x":
        while M_p // tm < 2 and tm >= 32:
            tm = max(16, _round_up(tm // 2, 16))
            M_p = _round_up(M, tm)

    # --- VMEM working set (buffer counts are explicit, no double counting) ---
    def _x_bufs(tm_, th_):
        # Single-buffer x (constant block index along h) when it is big enough
        # to matter and the h axis actually has multiple steps.
        return 1 if (H_p // th_ > 1 and tm_ * E_p * 2 >= (2 << 20)) else 2

    def _work_bytes(tm_, th_):
        return (
            _x_bufs(tm_, th_) * tm_ * E_p * 2        # x blocks (bf16)
            + 2 * E_p * th_ * 2                      # w1 blocks (bf16)
            + 2 * th_ * E_p * 2                      # w2 blocks (bf16)
            + 2 * th_ * 4                            # b1 blocks (f32)
            + 2 * E_p * 4                            # b2 blocks (f32)
            + 2 * tm_ * E_p * out_isz                # output blocks
            + (tm_ * E_p * 4 if acc_needed else 0)   # f32 scratch (non-f32 out)
        )

    budget = vmem_cap - (6 << 20)  # leave headroom for compiler scratch
    for _ in range(8):
        if _work_bytes(tm, th) <= budget:
            break
        if th > 256:
            th = _pick_th(H_p, th // 2)
        elif tm > 256:
            tm = max(256, _round_up(tm // 2, 16))
            M_p = _round_up(M, tm)
        elif th > 128:
            th = _pick_th(H_p, 128)
        elif tm > 16:
            tm = max(16, _round_up(tm // 2, 16))
            M_p = _round_up(M, tm)
        else:
            break

    work_bytes = _work_bytes(tm, th)
    vmem_limit = int(min(vmem_cap - (2 << 20), max(work_bytes + (8 << 20), 32 << 20)))
    sb_x = _x_bufs(tm, th) == 1

    # --- Activation prep (per call, cheap) ---
    x2d = x.reshape(M, E).astype(compute_dtype)
    x_p = jnp.pad(x2d, ((0, M_p - M), (0, E_p - E)))

    grid = (M_p // tm, H_p // th)
    in_specs = [
        _block_spec((tm, E_p), lambda i, h: (i, 0), single_buffer=sb_x),  # x rows
        pl.BlockSpec((E_p, th), lambda i, h: (0, h)),                     # W1 chunk
        pl.BlockSpec((1, th), lambda i, h: (0, h)),                       # b1 chunk
        pl.BlockSpec((th, E_p), lambda i, h: (h, 0)),                     # W2 chunk
        pl.BlockSpec((1, E_p), lambda i, h: (0, 0)),                      # b2
    ]

    kernel = _ffn_kernel_acc if acc_needed else _ffn_kernel_f32out
    scratch = [pltpu.VMEM((tm, E_p), jnp.float32)] if acc_needed else []

    out_p = pl.pallas_call(
        kernel,
        out_shape=jax.ShapeDtypeStruct((M_p, E_p), out_dtype),
        grid=grid,
        in_specs=in_specs,
        out_specs=pl.BlockSpec((tm, E_p), lambda i, h: (i, 0)),
        scratch_shapes=scratch,
        compiler_params=pltpu.CompilerParams(
            dimension_semantics=("parallel", "arbitrary"),
            vmem_limit_bytes=vmem_limit,
        ),
    )(x_p, w1_p, b1_p, w2_p, b2_p)

    return out_p[:M, :E].reshape(x.shape)


def _reference(x, w1, b1, w2, b2):
    h = x @ w1 + b1
    g = 0.5 * h * (1.0 + jnp.tanh(jnp.sqrt(2.0 / jnp.pi) * (h + 0.044715 * h ** 3)))
    return g @ w2 + b2


if __name__ == "__main__":
    # Small config consistent with the module: emb_dim=32 -> hidden=4*32=128.
    B, T, E = 2, 8, 32
    H = 4 * E

    key = jax.random.PRNGKey(0)
    kx, kw1, kb1, kw2, kb2 = jax.random.split(key, 5)

    x = jax.random.normal(kx, (B, T, E), dtype=jnp.float32)
    # PyTorch Linear stores weight as (out, in); here weights are already laid
    # out as (in, out) so the kernel computes x @ W + b directly.
    w1 = jax.random.normal(kw1, (E, H), dtype=jnp.float32) * 0.02
    b1 = jax.random.normal(kb1, (H,), dtype=jnp.float32) * 0.02
    w2 = jax.random.normal(kw2, (H, E), dtype=jnp.float32) * 0.02
    b2 = jax.random.normal(kb2, (E,), dtype=jnp.float32) * 0.02

    # Weight cast/pad hoisted out of the hot path: do it once.
    params = prepare_ffn_params(w1, b1, w2, b2)

    out = feed_forward(x, *params)
    out = jax.block_until_ready(out)

    ref = _reference(x, w1, b1, w2, b2)
    assert out.shape == (B, T, E)
    # bf16 MXU inputs (f32 accumulation) => slightly looser tolerance than f32.
    assert jnp.allclose(out, ref, atol=5e-3, rtol=1e-2), "mismatch vs reference"

    print("KERNEL_OK")
</pallas_src>

<mosaic_0001>
module attributes {stable_mosaic.version = 11 : i64} {
  func.func @_ffn_kernel_f32out(%arg0: i32, %arg1: i32, %arg2: memref<16x128xbf16, #tpu.memory_space<vmem>>, %arg3: memref<128x128xbf16, #tpu.memory_space<vmem>>, %arg4: memref<1x128xf32, #tpu.memory_space<vmem>>, %arg5: memref<128x128xbf16, #tpu.memory_space<vmem>>, %arg6: memref<1x128xf32, #tpu.memory_space<vmem>>, %arg7: memref<16x128xf32, #tpu.memory_space<vmem>>) attributes {dimension_semantics = [#tpu.dimension_semantics<parallel>, #tpu.dimension_semantics<arbitrary>], iteration_bounds = array<i64: 1, 1>, scalar_prefetch = 0 : i64, scratch_operands = 0 : i64, tpu.core_type = #tpu.core_type<tc>, window_params = [{transform_indices = @transform_0, window_bounds = array<i64: 16, 128>}, {transform_indices = @transform_1, window_bounds = array<i64: 128, 128>}, {transform_indices = @transform_2, window_bounds = array<i64: 1, 128>}, {transform_indices = @transform_3, window_bounds = array<i64: 128, 128>}, {pipeline_mode = #tpu.pipeline_mode<synchronous>, transform_indices = @transform_4, window_bounds = array<i64: 1, 128>}, {transform_indices = @transform_5, window_bounds = array<i64: 16, 128>}]} {
    %c0_i32 = arith.constant 0 : i32
    %0 = arith.cmpi eq, %arg1, %c0_i32 : i32
    %1 = arith.extui %0 : i1 to i32
    %c0_i32_0 = arith.constant 0 : i32
    %2 = arith.cmpi ne, %1, %c0_i32_0 : i32
    scf.if %2 {
      %cst_20 = arith.constant 0.000000e+00 : f32
      %32 = vector.broadcast %cst_20 : f32 to vector<16x128xf32>
      %c0_21 = arith.constant 0 : index
      %c0_22 = arith.constant 0 : index
      %33 = vector.load %arg7[%c0_21, %c0_22] : memref<16x128xf32, #tpu.memory_space<vmem>>, vector<16x128xf32>
      tpu.vector_store %arg7[%c0_21, %c0_22], %32 {strides = array<i32>} : memref<16x128xf32, #tpu.memory_space<vmem>>, vector<16x128xf32>,
    } else {
    }
    %c0 = arith.constant 0 : index
    %c0_1 = arith.constant 0 : index
    %3 = vector.load %arg2[%c0, %c0_1] : memref<16x128xbf16, #tpu.memory_space<vmem>>, vector<16x128xbf16>
    %c0_2 = arith.constant 0 : index
    %c0_3 = arith.constant 0 : index
    %4 = vector.load %arg3[%c0_2, %c0_3] : memref<128x128xbf16, #tpu.memory_space<vmem>>, vector<128x128xbf16>
    %cst = arith.constant dense<0.000000e+00> : vector<16x128xf32>
    %5 = tpu.matmul %3, %4, %cst {dimension_numbers = #tpu.dot_dimension_numbers<[1], [0], [0], [1], [0, 0, 1, 1], [], []>} : vector<16x128xbf16>, vector<128x128xbf16>, vector<16x128xf32> -> vector<16x128xf32>
    %c0_4 = arith.constant 0 : index
    %c0_5 = arith.constant 0 : index
    %6 = vector.load %arg4[%c0_4, %c0_5] : memref<1x128xf32, #tpu.memory_space<vmem>>, vector<1x128xf32>
    %7 = vector.broadcast %6 : vector<1x128xf32> to vector<16x128xf32>
    %8 = arith.addf %5, %7 : vector<16x128xf32>
    %9 = arith.mulf %8, %8 : vector<16x128xf32>
    %cst_6 = arith.constant 4.471500e-02 : f32
    %10 = vector.broadcast %cst_6 : f32 to vector<16x128xf32>
    %11 = arith.mulf %10, %9 : vector<16x128xf32>
    %cst_7 = arith.constant 1.000000e+00 : f32
    %12 = vector.broadcast %cst_7 : f32 to vector<16x128xf32>
    %13 = arith.addf %12, %11 : vector<16x128xf32>
    %14 = arith.mulf %8, %13 : vector<16x128xf32>
    %cst_8 = arith.constant 0.797884583 : f32
    %15 = vector.broadcast %cst_8 : f32 to vector<16x128xf32>
    %16 = arith.mulf %15, %14 : vector<16x128xf32>
    %cst_9 = arith.constant 5.000000e-01 : f32
    %17 = vector.broadcast %cst_9 : f32 to vector<16x128xf32>
    %18 = arith.mulf %17, %8 : vector<16x128xf32>
    %19 = math.tanh %16 : vector<16x128xf32>
    %cst_10 = arith.constant 1.000000e+00 : f32
    %20 = vector.broadcast %cst_10 : f32 to vector<16x128xf32>
    %21 = arith.addf %20, %19 : vector<16x128xf32>
    %22 = arith.mulf %18, %21 : vector<16x128xf32>
    %c0_11 = arith.constant 0 : index
    %c0_12 = arith.constant 0 : index
    %23 = vector.load %arg7[%c0_11, %c0_12] : memref<16x128xf32, #tpu.memory_space<vmem>>, vector<16x128xf32>
    %24 = arith.truncf %22 : vector<16x128xf32> to vector<16x128xbf16>
    %c0_13 = arith.constant 0 : index
    %c0_14 = arith.constant 0 : index
    %25 = vector.load %arg5[%c0_13, %c0_14] : memref<128x128xbf16, #tpu.memory_space<vmem>>, vector<128x128xbf16>
    %cst_15 = arith.constant dense<0.000000e+00> : vector<16x128xf32>
    %26 = tpu.matmul %24, %25, %cst_15 {dimension_numbers = #tpu.dot_dimension_numbers<[1], [0], [0], [1], [0, 0, 1, 1], [], []>} : vector<16x128xbf16>, vector<128x128xbf16>, vector<16x128xf32> -> vector<16x128xf32>
    %27 = arith.addf %23, %26 : vector<16x128xf32>
    %c0_16 = arith.constant 0 : index
    %c0_17 = arith.constant 0 : index
    %28 = vector.load %arg7[%c0_16, %c0_17] : memref<16x128xf32, #tpu.memory_space<vmem>>, vector<16x128xf32>
    tpu.vector_store %arg7[%c0_16, %c0_17], %27 {strides = array<i32>} : memref<16x128xf32, #tpu.memory_space<vmem>>, vector<16x128xf32>,
    %c0_i32_18 = arith.constant 0 : i32
    %29 = arith.cmpi eq, %arg1, %c0_i32_18 : i32
    %30 = arith.extui %29 : i1 to i32
    %c0_i32_19 = arith.constant 0 : i32
    %31 = arith.cmpi ne, %30, %c0_i32_19 : i32
    scf.if %31 {
      %c0_20 = arith.constant 0 : index
      %c0_21 = arith.constant 0 : index
      %32 = vector.load %arg7[%c0_20, %c0_21] : memref<16x128xf32, #tpu.memory_space<vmem>>, vector<16x128xf32>
      %c0_22 = arith.constant 0 : index
      %c0_23 = arith.constant 0 : index
      %33 = vector.load %arg6[%c0_22, %c0_23] : memref<1x128xf32, #tpu.memory_space<vmem>>, vector<1x128xf32>
      %34 = vector.broadcast %33 : vector<1x128xf32> to vector<16x128xf32>
      %35 = arith.addf %32, %34 : vector<16x128xf32>
      %c0_24 = arith.constant 0 : index
      %c0_25 = arith.constant 0 : index
      %36 = vector.load %arg7[%c0_24, %c0_25] : memref<16x128xf32, #tpu.memory_space<vmem>>, vector<16x128xf32>
      tpu.vector_store %arg7[%c0_24, %c0_25], %35 {strides = array<i32>} : memref<16x128xf32, #tpu.memory_space<vmem>>, vector<16x128xf32>,
    } else {
    }
    return
  }
  func.func @transform_0(%arg0: i32, %arg1: i32) -> (i32, i32) {
    %c0_i32 = arith.constant 0 : i32
    %c0_i32_0 = arith.constant 0 : i32
    return %arg0, %c0_i32 : i32, i32
  }
  func.func @transform_1(%arg0: i32, %arg1: i32) -> (i32, i32) {
    %c0_i32 = arith.constant 0 : i32
    %c0_i32_0 = arith.constant 0 : i32
    return %c0_i32, %arg1 : i32, i32
  }
  func.func @transform_2(%arg0: i32, %arg1: i32) -> (i32, i32) {
    %c0_i32 = arith.constant 0 : i32
    %c0_i32_0 = arith.constant 0 : i32
    return %c0_i32, %arg1 : i32, i32
  }
  func.func @transform_3(%arg0: i32, %arg1: i32) -> (i32, i32) {
    %c0_i32 = arith.constant 0 : i32
    %c0_i32_0 = arith.constant 0 : i32
    return %arg1, %c0_i32 : i32, i32
  }
  func.func @transform_4(%arg0: i32, %arg1: i32) -> (i32, i32) {
    %c0_i32 = arith.constant 0 : i32
    %c0_i32_0 = arith.constant 0 : i32
    %c0_i32_1 = arith.constant 0 : i32
    return %c0_i32, %c0_i32_0 : i32, i32
  }
  func.func @transform_5(%arg0: i32, %arg1: i32) -> (i32, i32) {
    %c0_i32 = arith.constant 0 : i32
    %c0_i32_0 = arith.constant 0 : i32
    return %arg0, %c0_i32 : i32, i32
  }
}

</mosaic_0001>

<bundles_post_ra>
// kernel: feed_forward.1
= control target key start
LH: loop header
LB: loop body
LE: loop exit
PB: predicated region body
PF: predicated region fallthrough
CT: control target
= control target key end

     0   :  { %10 = vsyncpa [#allocation3], 0  ;;  %s532_s0 = inlined_call_operand.vmem [shape: bf16[16,128], index: 0, kind: input, shape index: {}]   ;;  %s533_s1 = inlined_call_operand.hbm [shape: bf16[128,128], index: 1, kind: input, shape index: {}]   ;;  %s534_s2 = inlined_call_operand.vmem [shape: f32[1,128], index: 2, kind: input, shape index: {}]   ;;  %s535_s3 = inlined_call_operand.hbm [shape: bf16[128,128], index: 3, kind: input, shape index: {}]   ;;  %s536_s4 = inlined_call_operand.vmem [shape: f32[1,128], index: 4, kind: input, shape index: {}]   ;;  %s537_s5 = inlined_call_operand.vmem [shape: f32[16,128], index: 5, kind: output, shape index: {}]  }
   0x1   :  { %11 = vsyncpa [#allocation5], 0  ;;  %s475_s18 = smov [#allocation2]  }
   0x2   :  { %s19_s19 = sshll.u32 %s475_s18, 4  ;;  %s20_s19 = int_to_ptr.vmem [resolvable:$true] %s19_s19 }
   0x3   :  { %s439_s20 = scalar_lea.vmem %s20_s19, 1024  ;;  %p444_p1 = scmp.lt.s32.totalorder %s20_s19, %s20_s19 }
   0x4   :  { %p440_p0 = scmp.ne.s32.totalorder %s20_s19, %s439_s20  ;;  %p445_p2 = scmp.lt.s32.totalorder %s439_s20, %s439_s20 }
   0x6   :  { %p446_p3 = por %p445_p2, %p444_p1 }
   0x8   :  { %p447_p4 = pnand %p446_p3, %p440_p0 }
   0xa   :  { %450 = shalt.err (!%p447_p4)
}
   0xb   :  { %s476_s21 = smov 64   ;;  %s477_s22 = smov 4  }
   0xc   :  { %25 = dma.hbm_to_vmem [thread:$0]  %s533_s1, 1024, %s20_s19, [#allocation3], %s476_s21, %s476_s21, %s477_s22  }
   0xd   :  { %s478_s25 = smov [#allocation4]  }
   0xe   :  { %s33_s26 = sshll.u32 %s478_s25, 4  ;;  %s34_s26 = int_to_ptr.vmem [resolvable:$true] %s33_s26 }
   0xf   :  { %s459_s27 = scalar_lea.vmem %s34_s26, 1024  ;;  %p464_p6 = scmp.lt.s32.totalorder %s34_s26, %s34_s26 }
  0x10   :  { %p460_p5 = scmp.ne.s32.totalorder %s34_s26, %s459_s27  ;;  %p465_p7 = scmp.lt.s32.totalorder %s459_s27, %s459_s27 }
  0x12   :  { %p466_p8 = por %p465_p7, %p464_p6 }
  0x14   :  { %p467_p9 = pnand %p466_p8, %p460_p5 }
  0x16   :  { %470 = shalt.err (!%p467_p9)
}
  0x17   :  { %39 = dma.hbm_to_vmem [thread:$0]  %s535_s3, 1024, %s34_s26, [#allocation5], %s476_s21, %s476_s21, %s477_s22  }
  0x18   :  { %471 = dma.done.wait [#allocation3], 1024  }
  0x19   :  { %472 = vsyncadd [#allocation3], 4294966272 }
  0x1a   :  { %473 = dma.done.wait [#allocation5], 1024  }
  0x1b   :  { %474 = vsyncadd [#allocation5], 4294966272  ;;  %v479_v0 = vmov 0.0   ;;  %vm480_vm0 = vmmov 0   ;;  %v410_v1 = vld [vmem:[#allocation2 + $0x38] sm:$0xff]   ;;  %v411_v2 = vld [vmem:[#allocation2 + $0x30] sm:$0xff]  }
  0x1c   :  { %364 = vmatprep.subr.bf16.mxu0 %v479_v0  ;;  %380 = vmatprep.mubr.msk.bf16.mxu0 %vm480_vm0, %v479_v0  ;;  %v412_v3 = vld [vmem:[#allocation2 + $0x28] sm:$0xff]   ;;  %v413_v4 = vld [vmem:[#allocation2 + $0x20] sm:$0xff]   ;;  %v414_v5 = vld [vmem:[#allocation2 + $0x18] sm:$0xff]  }
  0x1d   :  { %384 = vmatprep.subr.bf16.mxu1 %v479_v0  ;;  %400 = vmatprep.mubr.msk.bf16.mxu1 %vm480_vm0, %v479_v0  ;;  %v415_v6 = vld [vmem:[#allocation2 + $0x10] sm:$0xff]   ;;  %v416_v7 = vld [vmem:[#allocation2 + $0x8] sm:$0xff]   ;;  %v417_v8 = vld [vmem:[#allocation2] sm:$0xff]  }
  0x1e   :  { %365 = vmatpush3.bf16.msra.mxu0 %v410_v1  ;;  %v418_v9 = vld [vmem:[%s532_s0] sm:$0xff]   ;;  %v419_v10 = vld [vmem:[#allocation4 + $0x38] sm:$0xff]   ;;  %v420_v11 = vld [vmem:[#allocation4 + $0x30] sm:$0xff]  }
  0x1f   :  { %366 = vmatprep.subr.bf16.mxu0 %v479_v0  ;;  %385 = vmatpush3.bf16.msra.mxu1 %v419_v10  ;;  %v421_v12 = vld [vmem:[#allocation4 + $0x28] sm:$0xff]   ;;  %v422_v13 = vld [vmem:[#allocation4 + $0x20] sm:$0xff]   ;;  %v423_v14 = vld [vmem:[#allocation4 + $0x18] sm:$0xff]  }
  0x20   :  { %386 = vmatprep.subr.bf16.mxu1 %v479_v0  ;;  %v424_v15 = vld [vmem:[#allocation4 + $0x10] sm:$0xff]   ;;  %v425_v16 = vld [vmem:[#allocation4 + $0x8] sm:$0xff]   ;;  %v426_v17 = vld [vmem:[#allocation4] sm:$0xff]  }
  0x21   :  { %v327_v18 = vld [vmem:[%s534_s2] ss:$0 sm:$0xff] }
  0x22   :  { %367 = vmatpush3.bf16.msra.mxu0 %v411_v2  ;;  %v345_v45 = vld [vmem:[%s536_s4] ss:$0 sm:$0xff] }
  0x23   :  { %368 = vmatprep.subr.bf16.mxu0 %v479_v0  ;;  %387 = vmatpush3.bf16.msra.mxu1 %v420_v11 }
  0x24   :  { %388 = vmatprep.subr.bf16.mxu1 %v479_v0 }
  0x26   :  { %369 = vmatpush3.bf16.msra.mxu0 %v412_v3 }
  0x27   :  { %370 = vmatprep.subr.bf16.mxu0 %v479_v0  ;;  %389 = vmatpush3.bf16.msra.mxu1 %v421_v12 }
  0x28   :  { %390 = vmatprep.subr.bf16.mxu1 %v479_v0 }
  0x2a   :  { %371 = vmatpush3.bf16.msra.mxu0 %v413_v4 }
  0x2b   :  { %372 = vmatprep.subr.bf16.mxu0 %v479_v0  ;;  %391 = vmatpush3.bf16.msra.mxu1 %v422_v13 }
  0x2c   :  { %392 = vmatprep.subr.bf16.mxu1 %v479_v0 }
  0x2e   :  { %373 = vmatpush3.bf16.msra.mxu0 %v414_v5 }
  0x2f   :  { %374 = vmatprep.subr.bf16.mxu0 %v479_v0  ;;  %393 = vmatpush3.bf16.msra.mxu1 %v423_v14 }
  0x30   :  { %394 = vmatprep.subr.bf16.mxu1 %v479_v0 }
  0x32   :  { %375 = vmatpush3.bf16.msra.mxu0 %v415_v6 }
  0x33   :  { %376 = vmatprep.subr.bf16.mxu0 %v479_v0  ;;  %395 = vmatpush3.bf16.msra.mxu1 %v424_v15 }
  0x34   :  { %396 = vmatprep.subr.bf16.mxu1 %v479_v0 }
  0x36   :  { %377 = vmatpush3.bf16.msra.mxu0 %v416_v7 }
  0x37   :  { %378 = vmatprep.subr.bf16.mxu0 %v479_v0  ;;  %397 = vmatpush3.bf16.msra.mxu1 %v425_v16 }
  0x38   :  { %398 = vmatprep.subr.bf16.mxu1 %v479_v0 }
  0x3a   :  { %379 = vmatpush3.bf16.msra.mxu0 %v417_v8 }
  0x3b   :  { %399 = vmatpush3.bf16.msra.mxu1 %v426_v17 }
  0x3d   :  { %381 = vmatmul.mubr.bf16.vlgmr.msra.gmra.mxu0 %v418_v9 }
  0xfd   :  { %v168_v19 = vpop.f32.mrf.mxu0 }
  0xfe   :  { %v169_v20 = vadd.f32 %v327_v18, %v168_v19 }
  0xff   :  { %v382_v21 = vpop.f32.mrf.mxu0 }
 0x100   :  { %v175_v22 = vmul.f32 %v169_v20, %v169_v20  ;;  %v185_v38 = vmul.f32 0.5, %v169_v20 }
 0x101   :  { %v171_v23 = vpop.f32.mrf.mxu0 }
 0x102   :  { %v177_v24 = vmul.f32 0.044715, %v175_v22  ;;  %v172_v25 = vadd.f32 %v327_v18, %v171_v23 }
 0x103   :  { %v383_v26 = vpop.f32.mrf.mxu0 }
 0x104   :  { %v179_v27 = vadd.f32 1.0, %v177_v24  ;;  %v176_v28 = vmul.f32 %v172_v25, %v172_v25  ;;  %v186_v39 = vmul.f32 0.5, %v172_v25 }
 0x106   :  { %v181_v29 = vmul.f32 %v179_v27, %v169_v20  ;;  %v178_v30 = vmul.f32 0.044715, %v176_v28 }
 0x108   :  { %v183_v31 = vmul.f32 0.7978846, %v181_v29  ;;  %v180_v32 = vadd.f32 1.0, %v178_v30 }
 0x10a   :  { %427 = vtanh.f32 %v183_v31  ;;  %v182_v33 = vmul.f32 %v180_v32, %v172_v25 }
 0x10c   :  { %v184_v34 = vmul.f32 0.7978846, %v182_v33 }
 0x10e   :  { %429 = vtanh.f32 %v184_v34 }
 0x117   :  { %v428_v35 = vpop.eup %427 }
 0x118   :  { %v189_v36 = vadd.f32 1.0, %v428_v35 }
 0x11a   :  { %v191_v41 = vmul.f32 %v189_v36, %v185_v38 }
 0x11b   :  { %v430_v37 = vpop.eup %429 }
 0x11c   :  { %v190_v40 = vadd.f32 1.0, %v430_v37 }
 0x11e   :  { %v192_v42 = vmul.f32 %v190_v40, %v186_v39 }
 0x120   :  { %v195_v43 = vpack.c.bf16 %v192_v42, %v191_v41 }
 0x122   :  { %401 = vmatmul.mubr.bf16.vlgmr.msra.gmra.mxu1 %v195_v43 }
 0x1e2   :  { %v294_v44 = vpop.f32.mrf.mxu1 }
 0x1e3   :  { %v317_v47 = vadd.f32 %v345_v45, %v294_v44 }
 0x1e4   :  { %v402_v46 = vpop.f32.mrf.mxu1 }
 0x1e5   :  { %319 = vst [vmem:[%s537_s5] sm:$0xff] %v317_v47 }
 0x1e6   :  { %v297_v48 = vpop.f32.mrf.mxu1 }
 0x1e7   :  { %v318_v50 = vadd.f32 %v345_v45, %v297_v48 }
 0x1e8   :  { %v403_v49 = vpop.f32.mrf.mxu1 }
 0x1e9   :  { %320 = vst [vmem:[%s537_s5 + $0x8] sm:$0xff] %v318_v50 }
 0x1ea   :  { %325 = vsyncpa [#allocation3], 1 }
 0x1eb   :  { %326 = vsyncpa [#allocation5], 1 }

</bundles_post_ra>
